<compile_context>
chip_gen: v7x
topology: tpu7x:2x2x1
jax: 0.10.0
libtpu: 0.0.40
codegen_flags: <defaults>
</compile_context>

<pallas_src>
import functools

import jax
import jax.numpy as jnp
from jax import lax
from jax.experimental import pallas as pl
from jax.experimental.pallas import tpu as pltpu

EPS = 1e-15
PAD = 3
# Both 7x7 kernels in the torch module are rank-1 (separable):
#   kernel_x[r, c] = KW[c],   kernel_y[r, c] = KW[r],  KW = (-1,-1,-1,0,1,1,1)
_NSUMS = 9


def _iota2(n):
    i = lax.broadcasted_iota(jnp.int32, (n, n), 0)
    j = lax.broadcasted_iota(jnp.int32, (n, n), 1)
    return i - j


def _band_box(n, dtype):
    """M[i,j] = 1 if |i-j| <= 3 else 0  (7-wide box sum)."""
    d = _iota2(n)
    return (jnp.abs(d) <= PAD).astype(jnp.float32).astype(dtype)


def _band_sign(n, dtype, flip=False):
    """M[i,j] = KW[i-j+3] = sign(i-j) inside the 7-wide band, else 0.

    flip=True gives the transposed (kernel_y) orientation, sign(j-i).
    """
    d = _iota2(n)
    inb = jnp.abs(d) <= PAD
    pos = ((d > 0) & inb).astype(jnp.float32)
    neg = ((d < 0) & inb).astype(jnp.float32)
    s = (neg - pos) if flip else (pos - neg)
    return s.astype(dtype)


def _make_loss_kernel(bb, H, W, conv_dtype):
    """Kernel processing `bb` samples per grid step."""

    def kernel(logits_ref, tgt_ref, out_ref):
        # Loop-invariant band matrices: generated on the VPU each step (cheap),
        # never streamed from HBM, never double-buffered in VMEM.
        sv = _band_box(H, conv_dtype)            # (H, H) 7-row box sum
        sh = _band_box(W, conv_dtype)            # (W, W) 7-col box sum
        bx = _band_sign(W, conv_dtype)           # (W, W) KW over columns (kernel_x)
        by = _band_sign(H, conv_dtype, flip=True)  # (H, H) KW over rows (kernel_y)

        lane = lax.broadcasted_iota(jnp.int32, (8, 128), 1)

        for i in range(bb):                      # unrolled, bb is small & static
            # cast after the DMA so HBM traffic stays in native dtype
            l0 = logits_ref[i, 0].astype(jnp.float32)        # (H, W)
            l1 = logits_ref[i, 1].astype(jnp.float32)        # (H, W)
            t = tgt_ref[i].astype(jnp.float32)               # (H, W)
            tc = tgt_ref[i].astype(conv_dtype)               # conv operand copy

            # ---- softmax over the 2-channel axis (sigmoid form: 1 exp) ----
            p0 = 1.0 / (1.0 + jnp.exp(l1 - l0))
            p1 = 1.0 - p0

            # ---- 7x7 separable edge conv (cross-corr, padding=3) on the MXU ----
            # Zero padding folded into the band matrices:
            #   x = (Sv @ t) @ Bx     y = By @ (t @ Sh)
            # bf16 operands are bit-exact here (0/1 mask, {-1,0,1} weights,
            # box sums <= 7); accumulation is f32.
            rowsum = jnp.dot(sv, tc, preferred_element_type=jnp.float32)
            x = jnp.dot(rowsum.astype(conv_dtype), bx,
                        preferred_element_type=jnp.float32)
            colsum = jnp.dot(tc, sh, preferred_element_type=jnp.float32)
            y = jnp.dot(by, colsum.astype(conv_dtype),
                        preferred_element_type=jnp.float32)
            edge = jnp.sqrt(x * x + y * y + EPS)

            # ---- 9 irreducible partial sums (rest recovered algebraically) ----
            te = t * edge
            p0t = p0 * t
            pte = t + 0.005 * te                 # t * (1 + 0.005*edge)
            nte = (1.0 - t) + 0.2 * (edge - te)  # (1-t) * (1 + 0.2*edge)
            p0pte = p0 * pte
            p1nte = p1 * nte

            fields = (
                t,                # S0
                edge,             # S1
                te,               # S2
                p0,               # S3
                p0t,              # S4
                p0 * edge,        # S5
                p0t * edge,       # S6
                p0pte * p0pte,    # S7
                p1nte * p1nte,    # S8
            )

            # two-stage reduce: sublane reduce to (1, W), then one short lane
            # reduce -> cross-lane XLU only touches single rows.
            row = jnp.zeros((8, 128), jnp.float32)
            for k, f in enumerate(fields):
                s = jnp.sum(jnp.sum(f, axis=0, keepdims=True))
                row = jnp.where(lane == k, s, row)

            # lane-dense (8, 128) block -> unmasked vst
            out_ref[i] = row

    return kernel


def _pick_bb(batch):
    """Samples per grid step: amortize step overhead, keep >=2 steps if possible."""
    for bb in (4, 2):
        if batch % bb == 0 and batch // bb >= 2:
            return bb
    return 1


@functools.partial(jax.jit, static_argnames=("binary_target",))
def my_loss_vector_intra_and_inter(logits, target, binary_target=True):
    """logits: (B, 2, H, W); target: (B, H, W) mask. Returns shape (1,) float32.

    binary_target=True enables the (bit-exact for 0/1 masks) bf16 conv path.
    """
    B, C, H, W = logits.shape
    assert C == 2
    assert target.shape == (B, H, W)

    bb = _pick_bb(B)
    conv_dtype = jnp.bfloat16 if binary_target else jnp.float32
    kernel = _make_loss_kernel(bb, H, W, conv_dtype)

    # VMEM budget: double-buffered logits/target/out tiles + in-kernel band
    # matrices + ~20 live (H, W) f32 temporaries per sample, with slack.
    it_l = jnp.dtype(logits.dtype).itemsize
    it_t = jnp.dtype(target.dtype).itemsize
    it_c = jnp.dtype(conv_dtype).itemsize
    tiles = 2 * (bb * C * H * W * it_l + bb * H * W * it_t + bb * 8 * 128 * 4)
    bands = 2 * (H * H + W * W) * it_c
    temps = 20 * bb * H * W * 4
    budget = tiles + bands + temps + (2 << 20)
    vmem_limit = int(max(16 << 20, min(budget, 64 << 20)))

    partials = pl.pallas_call(
        kernel,
        out_shape=jax.ShapeDtypeStruct((B, 8, 128), jnp.float32),
        grid=(B // bb,),
        in_specs=[
            pl.BlockSpec((bb, C, H, W), lambda b: (b, 0, 0, 0)),
            pl.BlockSpec((bb, H, W), lambda b: (b, 0, 0)),
        ],
        out_specs=pl.BlockSpec((bb, 8, 128), lambda b: (b, 0, 0)),
        compiler_params=pltpu.CompilerParams(
            dimension_semantics=("parallel",),
            vmem_limit_bytes=vmem_limit,
        ),
    )(logits, target)
    # TODO(synk): for very large H (v7x 64 MiB VMEM) add an H-tiling grid axis
    #             with a PAD=3 halo; the band matmuls tile naturally along H.
    # TODO(synk): if the deployed W < 128 (or not a multiple of 128), fold W/rows
    #             into the lane dim for the elementwise pass (lane-dense vregs).

    # ---- scalar finale (≈30 flops) in plain JAX outside the kernel ----
    S = jnp.sum(partials[:, 0, :_NSUMS], axis=0)
    s0, s1, s2, s3, s4, s5, s6, s7, s8 = [S[i] for i in range(_NSUMS)]

    n_total = jnp.float32(B * H * W)
    s_t = s0
    s_nt = n_total - s0                         # sum(neg_target)
    s_pte = s0 + 0.005 * s2                     # sum(pos_target_edge)
    s_nte = s_nt + 0.2 * (s1 - s2)              # sum(neg_target_edge)
    s_p0t = s4
    s_p1t = s0 - s4
    s_p0nt = s3 - s4
    s_p1nt = s_nt - s_p0nt
    s_p0nte = s_p0nt + 0.2 * (s5 - s6)
    s_p1pte = s_p1t + 0.005 * (s2 - s6)

    pos1_mean = s_p0nt / s_nt
    pos1 = 1.0 / (s_p0nte / s_nte) - 1.0
    pos2_mean = s_p1t / s_t
    pos2 = 1.0 / (s_p1pte / s_pte) - 1.0
    pos_loss = (pos1 + pos2) / 2.0
    pos_var = ((1.0 - pos1_mean) ** 2 + (1.0 - pos2_mean) ** 2) / 2.0

    neg1_mean = s_p0t / s_t
    neg1 = s7 / s_t
    neg2_mean = s_p1nt / s_nt
    neg2 = s8 / s_nt
    neg_loss = (neg1 + neg2) / 2.0
    neg_var = (neg1_mean + neg2_mean) / 2.0

    center_distance = (pos1_mean - neg1_mean) ** 2 + (neg2_mean - pos2_mean) ** 2
    neg_center_distance = jax.nn.sigmoid((2.0 - center_distance) ** 2) - 0.5
    var = jax.nn.sigmoid((pos_var + neg_var) / 2.0) - 0.5
    neg_loss_s = jax.nn.sigmoid(neg_loss) - 0.5
    pos_loss_s = jax.nn.sigmoid(pos_loss) - 0.5
    area = (neg_loss_s + pos_loss_s) / 2.0

    return jnp.reshape((area + neg_center_distance + var) / 3.0, (1,))


def _reference(logits, target):
    """Pure-JAX mirror of the PyTorch forward, for correctness checking."""
    KW = (-1.0, -1.0, -1.0, 0.0, 1.0, 1.0, 1.0)
    target = target.astype(jnp.float32)
    p = jax.nn.softmax(logits.astype(jnp.float32), axis=1)
    w = jnp.array(KW, jnp.float32)
    kx = jnp.broadcast_to(w[None, :], (7, 7))
    ky = kx.T
    tgt4 = target[:, None]  # (B, 1, H, W)

    def conv(k):
        return lax.conv_general_dilated(
            tgt4, k[None, None], (1, 1), [(PAD, PAD), (PAD, PAD)]
        )[:, 0]

    x = conv(kx)
    y = conv(ky)
    edge = jnp.sqrt(x * x + y * y + EPS)
    nt = 1.0 - target
    pte = target + target * edge * 0.005
    nte = nt + nt * edge * 0.2
    p0, p1 = p[:, 0], p[:, 1]

    s_t, s_nt, s_pte, s_nte = target.sum(), nt.sum(), pte.sum(), nte.sum()
    pos1_mean = (p0 * nt).sum() / s_nt
    pos1 = 1.0 / ((p0 * nte).sum() / s_nte) - 1.0
    pos2_mean = (p1 * target).sum() / s_t
    pos2 = 1.0 / ((p1 * pte).sum() / s_pte) - 1.0
    pos_loss = (pos1 + pos2) / 2.0
    pos_var = ((1.0 - pos1_mean) ** 2 + (1.0 - pos2_mean) ** 2) / 2.0
    neg1_mean = (p0 * target).sum() / s_t
    neg1 = ((p0 * pte) ** 2).sum() / s_t
    neg2_mean = (p1 * nt).sum() / s_nt
    neg2 = ((p1 * nte) ** 2).sum() / s_nt
    neg_loss = (neg1 + neg2) / 2.0
    neg_var = (neg1_mean + neg2_mean) / 2.0
    cd = (pos1_mean - neg1_mean) ** 2 + (neg2_mean - pos2_mean) ** 2
    ncd = jax.nn.sigmoid((2.0 - cd) ** 2) - 0.5
    var = jax.nn.sigmoid((pos_var + neg_var) / 2.0) - 0.5
    neg_loss = jax.nn.sigmoid(neg_loss) - 0.5
    pos_loss = jax.nn.sigmoid(pos_loss) - 0.5
    area = (neg_loss + pos_loss) / 2.0
    return jnp.reshape((area + ncd + var) / 3.0, (1,))


if __name__ == "__main__":
    key = jax.random.PRNGKey(0)
    k1, k2 = jax.random.split(key)

    # primary shape from the module spec: batch=2, channels=2, spatial=16
    B, C, H, W = 2, 2, 16, 16
    logits = jax.random.normal(k1, (B, C, H, W), dtype=jnp.float32)
    target = (jax.random.uniform(k2, (B, H, W)) > 0.5).astype(jnp.float32)

    out = jax.block_until_ready(my_loss_vector_intra_and_inter(logits, target))
    ref = _reference(logits, target)
    assert out.shape == (1,)
    assert jnp.allclose(out, ref, atol=1e-5, rtol=1e-5), (out, ref)

    # also exercise the bb > 1 (multi-sample-per-grid-step) path
    k3, k4 = jax.random.split(k2)
    B2 = 4
    logits2 = jax.random.normal(k3, (B2, C, H, W), dtype=jnp.float32)
    target2 = (jax.random.uniform(k4, (B2, H, W)) > 0.5).astype(jnp.float32)
    out2 = jax.block_until_ready(my_loss_vector_intra_and_inter(logits2, target2))
    ref2 = _reference(logits2, target2)
    assert jnp.allclose(out2, ref2, atol=1e-5, rtol=1e-5), (out2, ref2)

    print("KERNEL_OK")
</pallas_src>

<mosaic_0001>
module attributes {stable_mosaic.version = 11 : i64} {
  func.func @kernel(%arg0: i32, %arg1: memref<1x2x16x16xf32, #tpu.memory_space<vmem>>, %arg2: memref<1x16x16xf32, #tpu.memory_space<vmem>>, %arg3: memref<1x8x128xf32, #tpu.memory_space<vmem>>) attributes {dimension_semantics = [#tpu.dimension_semantics<parallel>], iteration_bounds = array<i64: 2>, scalar_prefetch = 0 : i64, scratch_operands = 0 : i64, tpu.core_type = #tpu.core_type<tc>, window_params = [{transform_indices = @transform_0, window_bounds = array<i64: 1, 2, 16, 16>}, {transform_indices = @transform_1, window_bounds = array<i64: 1, 16, 16>}, {transform_indices = @transform_2, window_bounds = array<i64: 1, 8, 128>}]} {
    %0 = tpu.iota {dimensions = array<i32: 0>} : vector<16x16xi32>
    %1 = tpu.iota {dimensions = array<i32: 1>} : vector<16x16xi32>
    %2 = arith.subi %0, %1 : vector<16x16xi32>
    %3 = math.absi %2 : vector<16x16xi32>
    %c3_i32 = arith.constant 3 : i32
    %4 = vector.broadcast %c3_i32 : i32 to vector<16x16xi32>
    %5 = arith.cmpi sle, %3, %4 : vector<16x16xi32>
    %6 = arith.extui %5 : vector<16x16xi1> to vector<16x16xi32>
    %7 = arith.sitofp %6 : vector<16x16xi32> to vector<16x16xf32>
    %8 = arith.truncf %7 : vector<16x16xf32> to vector<16x16xbf16>
    %9 = tpu.iota {dimensions = array<i32: 0>} : vector<16x16xi32>
    %10 = tpu.iota {dimensions = array<i32: 1>} : vector<16x16xi32>
    %11 = arith.subi %9, %10 : vector<16x16xi32>
    %12 = math.absi %11 : vector<16x16xi32>
    %c3_i32_0 = arith.constant 3 : i32
    %13 = vector.broadcast %c3_i32_0 : i32 to vector<16x16xi32>
    %14 = arith.cmpi sle, %12, %13 : vector<16x16xi32>
    %15 = arith.extui %14 : vector<16x16xi1> to vector<16x16xi32>
    %16 = arith.sitofp %15 : vector<16x16xi32> to vector<16x16xf32>
    %17 = arith.truncf %16 : vector<16x16xf32> to vector<16x16xbf16>
    %18 = tpu.iota {dimensions = array<i32: 0>} : vector<16x16xi32>
    %19 = tpu.iota {dimensions = array<i32: 1>} : vector<16x16xi32>
    %20 = arith.subi %18, %19 : vector<16x16xi32>
    %21 = math.absi %20 : vector<16x16xi32>
    %c3_i32_1 = arith.constant 3 : i32
    %22 = vector.broadcast %c3_i32_1 : i32 to vector<16x16xi32>
    %23 = arith.cmpi sle, %21, %22 : vector<16x16xi32>
    %c0_i32 = arith.constant 0 : i32
    %24 = vector.broadcast %c0_i32 : i32 to vector<16x16xi32>
    %25 = arith.cmpi sgt, %20, %24 : vector<16x16xi32>
    %26 = arith.andi %25, %23 : vector<16x16xi1>
    %27 = arith.extui %26 : vector<16x16xi1> to vector<16x16xi32>
    %28 = arith.sitofp %27 : vector<16x16xi32> to vector<16x16xf32>
    %c0_i32_2 = arith.constant 0 : i32
    %29 = vector.broadcast %c0_i32_2 : i32 to vector<16x16xi32>
    %30 = arith.cmpi slt, %20, %29 : vector<16x16xi32>
    %31 = arith.andi %30, %23 : vector<16x16xi1>
    %32 = arith.extui %31 : vector<16x16xi1> to vector<16x16xi32>
    %33 = arith.sitofp %32 : vector<16x16xi32> to vector<16x16xf32>
    %34 = arith.subf %28, %33 : vector<16x16xf32>
    %35 = arith.truncf %34 : vector<16x16xf32> to vector<16x16xbf16>
    %36 = tpu.iota {dimensions = array<i32: 0>} : vector<16x16xi32>
    %37 = tpu.iota {dimensions = array<i32: 1>} : vector<16x16xi32>
    %38 = arith.subi %36, %37 : vector<16x16xi32>
    %39 = math.absi %38 : vector<16x16xi32>
    %c3_i32_3 = arith.constant 3 : i32
    %40 = vector.broadcast %c3_i32_3 : i32 to vector<16x16xi32>
    %41 = arith.cmpi sle, %39, %40 : vector<16x16xi32>
    %c0_i32_4 = arith.constant 0 : i32
    %42 = vector.broadcast %c0_i32_4 : i32 to vector<16x16xi32>
    %43 = arith.cmpi sgt, %38, %42 : vector<16x16xi32>
    %44 = arith.andi %43, %41 : vector<16x16xi1>
    %45 = arith.extui %44 : vector<16x16xi1> to vector<16x16xi32>
    %46 = arith.sitofp %45 : vector<16x16xi32> to vector<16x16xf32>
    %c0_i32_5 = arith.constant 0 : i32
    %47 = vector.broadcast %c0_i32_5 : i32 to vector<16x16xi32>
    %48 = arith.cmpi slt, %38, %47 : vector<16x16xi32>
    %49 = arith.andi %48, %41 : vector<16x16xi1>
    %50 = arith.extui %49 : vector<16x16xi1> to vector<16x16xi32>
    %51 = arith.sitofp %50 : vector<16x16xi32> to vector<16x16xf32>
    %52 = arith.subf %51, %46 : vector<16x16xf32>
    %53 = arith.truncf %52 : vector<16x16xf32> to vector<16x16xbf16>
    %54 = tpu.iota {dimensions = array<i32: 1>} : vector<8x128xi32>
    %c0 = arith.constant 0 : index
    %c0_6 = arith.constant 0 : index
    %c0_7 = arith.constant 0 : index
    %c0_8 = arith.constant 0 : index
    %55 = vector.load %arg1[%c0, %c0_6, %c0_7, %c0_8] : memref<1x2x16x16xf32, #tpu.memory_space<vmem>>, vector<1x1x16x16xf32>
    %56 = vector.shape_cast %55 : vector<1x1x16x16xf32> to vector<16x16xf32>
    %c0_9 = arith.constant 0 : index
    %c1 = arith.constant 1 : index
    %c0_10 = arith.constant 0 : index
    %c0_11 = arith.constant 0 : index
    %57 = vector.load %arg1[%c0_9, %c1, %c0_10, %c0_11] : memref<1x2x16x16xf32, #tpu.memory_space<vmem>>, vector<1x1x16x16xf32>
    %58 = vector.shape_cast %57 : vector<1x1x16x16xf32> to vector<16x16xf32>
    %c0_12 = arith.constant 0 : index
    %c0_13 = arith.constant 0 : index
    %c0_14 = arith.constant 0 : index
    %59 = vector.load %arg2[%c0_12, %c0_13, %c0_14] : memref<1x16x16xf32, #tpu.memory_space<vmem>>, vector<1x16x16xf32>
    %60 = vector.shape_cast %59 : vector<1x16x16xf32> to vector<16x16xf32>
    %c0_15 = arith.constant 0 : index
    %c0_16 = arith.constant 0 : index
    %c0_17 = arith.constant 0 : index
    %61 = vector.load %arg2[%c0_15, %c0_16, %c0_17] : memref<1x16x16xf32, #tpu.memory_space<vmem>>, vector<1x16x16xf32>
    %62 = vector.shape_cast %61 : vector<1x16x16xf32> to vector<16x16xf32>
    %63 = arith.truncf %62 : vector<16x16xf32> to vector<16x16xbf16>
    %64 = arith.subf %58, %56 : vector<16x16xf32>
    %65 = math.exp %64 : vector<16x16xf32>
    %cst = arith.constant 1.000000e+00 : f32
    %66 = vector.broadcast %cst : f32 to vector<16x16xf32>
    %67 = arith.addf %66, %65 : vector<16x16xf32>
    %cst_18 = arith.constant 1.000000e+00 : f32
    %68 = vector.broadcast %cst_18 : f32 to vector<16x16xf32>
    %69 = arith.divf %68, %67 : vector<16x16xf32>
    %cst_19 = arith.constant 1.000000e+00 : f32
    %70 = vector.broadcast %cst_19 : f32 to vector<16x16xf32>
    %71 = arith.subf %70, %69 : vector<16x16xf32>
    %cst_20 = arith.constant dense<0.000000e+00> : vector<16x16xf32>
    %72 = tpu.matmul %8, %63, %cst_20 {dimension_numbers = #tpu.dot_dimension_numbers<[1], [0], [0], [1], [0, 0, 1, 1], [], []>} : vector<16x16xbf16>, vector<16x16xbf16>, vector<16x16xf32> -> vector<16x16xf32>
    %73 = arith.truncf %72 : vector<16x16xf32> to vector<16x16xbf16>
    %cst_21 = arith.constant dense<0.000000e+00> : vector<16x16xf32>
    %74 = tpu.matmul %73, %35, %cst_21 {dimension_numbers = #tpu.dot_dimension_numbers<[1], [0], [0], [1], [0, 0, 1, 1], [], []>} : vector<16x16xbf16>, vector<16x16xbf16>, vector<16x16xf32> -> vector<16x16xf32>
    %cst_22 = arith.constant dense<0.000000e+00> : vector<16x16xf32>
    %75 = tpu.matmul %63, %17, %cst_22 {dimension_numbers = #tpu.dot_dimension_numbers<[1], [0], [0], [1], [0, 0, 1, 1], [], []>} : vector<16x16xbf16>, vector<16x16xbf16>, vector<16x16xf32> -> vector<16x16xf32>
    %76 = arith.truncf %75 : vector<16x16xf32> to vector<16x16xbf16>
    %cst_23 = arith.constant dense<0.000000e+00> : vector<16x16xf32>
    %77 = tpu.matmul %53, %76, %cst_23 {dimension_numbers = #tpu.dot_dimension_numbers<[1], [0], [0], [1], [0, 0, 1, 1], [], []>} : vector<16x16xbf16>, vector<16x16xbf16>, vector<16x16xf32> -> vector<16x16xf32>
    %78 = arith.mulf %74, %74 : vector<16x16xf32>
    %79 = arith.mulf %77, %77 : vector<16x16xf32>
    %80 = arith.addf %78, %79 : vector<16x16xf32>
    %cst_24 = arith.constant 1.000000e-15 : f32
    %81 = vector.broadcast %cst_24 : f32 to vector<16x16xf32>
    %82 = arith.addf %80, %81 : vector<16x16xf32>
    %83 = math.sqrt %82 : vector<16x16xf32>
    %84 = arith.mulf %60, %83 : vector<16x16xf32>
    %85 = arith.mulf %69, %60 : vector<16x16xf32>
    %cst_25 = arith.constant 5.000000e-03 : f32
    %86 = vector.broadcast %cst_25 : f32 to vector<16x16xf32>
    %87 = arith.mulf %86, %84 : vector<16x16xf32>
    %88 = arith.addf %60, %87 : vector<16x16xf32>
    %cst_26 = arith.constant 1.000000e+00 : f32
    %89 = vector.broadcast %cst_26 : f32 to vector<16x16xf32>
    %90 = arith.subf %89, %60 : vector<16x16xf32>
    %91 = arith.subf %83, %84 : vector<16x16xf32>
    %cst_27 = arith.constant 2.000000e-01 : f32
    %92 = vector.broadcast %cst_27 : f32 to vector<16x16xf32>
    %93 = arith.mulf %92, %91 : vector<16x16xf32>
    %94 = arith.addf %90, %93 : vector<16x16xf32>
    %95 = arith.mulf %69, %88 : vector<16x16xf32>
    %96 = arith.mulf %71, %94 : vector<16x16xf32>
    %97 = arith.mulf %69, %83 : vector<16x16xf32>
    %98 = arith.mulf %85, %83 : vector<16x16xf32>
    %99 = arith.mulf %95, %95 : vector<16x16xf32>
    %100 = arith.mulf %96, %96 : vector<16x16xf32>
    %cst_28 = arith.constant 0.000000e+00 : f32
    %101 = vector.broadcast %cst_28 : f32 to vector<8x128xf32>
    %cst_29 = arith.constant dense<0.000000e+00> : vector<16xf32>
    %102 = vector.multi_reduction <add>, %60, %cst_29 [0] : vector<16x16xf32> to vector<16xf32>
    %103 = vector.shape_cast %102 : vector<16xf32> to vector<1x16xf32>
    %104 = vector.shape_cast %103 : vector<1x16xf32> to vector<1x1x16xf32>
    %cst_30 = arith.constant dense<0.000000e+00> : vector<1xf32>
    %105 = vector.multi_reduction <add>, %104, %cst_30 [1, 2] : vector<1x1x16xf32> to vector<1xf32>
    %106 = vector.shape_cast %105 : vector<1xf32> to vector<1x1x1xf32>
    %107 = vector.extract %106[0, 0, 0] : f32 from vector<1x1x1xf32>
    %c0_i32_31 = arith.constant 0 : i32
    %108 = vector.broadcast %c0_i32_31 : i32 to vector<8x128xi32>
    %109 = arith.cmpi eq, %54, %108 : vector<8x128xi32>
    %110 = vector.broadcast %107 : f32 to vector<8x128xf32>
    %111 = arith.select %109, %110, %101 : vector<8x128xi1>, vector<8x128xf32>
    %cst_32 = arith.constant dense<0.000000e+00> : vector<16xf32>
    %112 = vector.multi_reduction <add>, %83, %cst_32 [0] : vector<16x16xf32> to vector<16xf32>
    %113 = vector.shape_cast %112 : vector<16xf32> to vector<1x16xf32>
    %114 = vector.shape_cast %113 : vector<1x16xf32> to vector<1x1x16xf32>
    %cst_33 = arith.constant dense<0.000000e+00> : vector<1xf32>
    %115 = vector.multi_reduction <add>, %114, %cst_33 [1, 2] : vector<1x1x16xf32> to vector<1xf32>
    %116 = vector.shape_cast %115 : vector<1xf32> to vector<1x1x1xf32>
    %117 = vector.extract %116[0, 0, 0] : f32 from vector<1x1x1xf32>
    %c1_i32 = arith.constant 1 : i32
    %118 = vector.broadcast %c1_i32 : i32 to vector<8x128xi32>
    %119 = arith.cmpi eq, %54, %118 : vector<8x128xi32>
    %120 = vector.broadcast %117 : f32 to vector<8x128xf32>
    %121 = arith.select %119, %120, %111 : vector<8x128xi1>, vector<8x128xf32>
    %cst_34 = arith.constant dense<0.000000e+00> : vector<16xf32>
    %122 = vector.multi_reduction <add>, %84, %cst_34 [0] : vector<16x16xf32> to vector<16xf32>
    %123 = vector.shape_cast %122 : vector<16xf32> to vector<1x16xf32>
    %124 = vector.shape_cast %123 : vector<1x16xf32> to vector<1x1x16xf32>
    %cst_35 = arith.constant dense<0.000000e+00> : vector<1xf32>
    %125 = vector.multi_reduction <add>, %124, %cst_35 [1, 2] : vector<1x1x16xf32> to vector<1xf32>
    %126 = vector.shape_cast %125 : vector<1xf32> to vector<1x1x1xf32>
    %127 = vector.extract %126[0, 0, 0] : f32 from vector<1x1x1xf32>
    %c2_i32 = arith.constant 2 : i32
    %128 = vector.broadcast %c2_i32 : i32 to vector<8x128xi32>
    %129 = arith.cmpi eq, %54, %128 : vector<8x128xi32>
    %130 = vector.broadcast %127 : f32 to vector<8x128xf32>
    %131 = arith.select %129, %130, %121 : vector<8x128xi1>, vector<8x128xf32>
    %cst_36 = arith.constant dense<0.000000e+00> : vector<16xf32>
    %132 = vector.multi_reduction <add>, %69, %cst_36 [0] : vector<16x16xf32> to vector<16xf32>
    %133 = vector.shape_cast %132 : vector<16xf32> to vector<1x16xf32>
    %134 = vector.shape_cast %133 : vector<1x16xf32> to vector<1x1x16xf32>
    %cst_37 = arith.constant dense<0.000000e+00> : vector<1xf32>
    %135 = vector.multi_reduction <add>, %134, %cst_37 [1, 2] : vector<1x1x16xf32> to vector<1xf32>
    %136 = vector.shape_cast %135 : vector<1xf32> to vector<1x1x1xf32>
    %137 = vector.extract %136[0, 0, 0] : f32 from vector<1x1x1xf32>
    %c3_i32_38 = arith.constant 3 : i32
    %138 = vector.broadcast %c3_i32_38 : i32 to vector<8x128xi32>
    %139 = arith.cmpi eq, %54, %138 : vector<8x128xi32>
    %140 = vector.broadcast %137 : f32 to vector<8x128xf32>
    %141 = arith.select %139, %140, %131 : vector<8x128xi1>, vector<8x128xf32>
    %cst_39 = arith.constant dense<0.000000e+00> : vector<16xf32>
    %142 = vector.multi_reduction <add>, %85, %cst_39 [0] : vector<16x16xf32> to vector<16xf32>
    %143 = vector.shape_cast %142 : vector<16xf32> to vector<1x16xf32>
    %144 = vector.shape_cast %143 : vector<1x16xf32> to vector<1x1x16xf32>
    %cst_40 = arith.constant dense<0.000000e+00> : vector<1xf32>
    %145 = vector.multi_reduction <add>, %144, %cst_40 [1, 2] : vector<1x1x16xf32> to vector<1xf32>
    %146 = vector.shape_cast %145 : vector<1xf32> to vector<1x1x1xf32>
    %147 = vector.extract %146[0, 0, 0] : f32 from vector<1x1x1xf32>
    %c4_i32 = arith.constant 4 : i32
    %148 = vector.broadcast %c4_i32 : i32 to vector<8x128xi32>
    %149 = arith.cmpi eq, %54, %148 : vector<8x128xi32>
    %150 = vector.broadcast %147 : f32 to vector<8x128xf32>
    %151 = arith.select %149, %150, %141 : vector<8x128xi1>, vector<8x128xf32>
    %cst_41 = arith.constant dense<0.000000e+00> : vector<16xf32>
    %152 = vector.multi_reduction <add>, %97, %cst_41 [0] : vector<16x16xf32> to vector<16xf32>
    %153 = vector.shape_cast %152 : vector<16xf32> to vector<1x16xf32>
    %154 = vector.shape_cast %153 : vector<1x16xf32> to vector<1x1x16xf32>
    %cst_42 = arith.constant dense<0.000000e+00> : vector<1xf32>
    %155 = vector.multi_reduction <add>, %154, %cst_42 [1, 2] : vector<1x1x16xf32> to vector<1xf32>
    %156 = vector.shape_cast %155 : vector<1xf32> to vector<1x1x1xf32>
    %157 = vector.extract %156[0, 0, 0] : f32 from vector<1x1x1xf32>
    %c5_i32 = arith.constant 5 : i32
    %158 = vector.broadcast %c5_i32 : i32 to vector<8x128xi32>
    %159 = arith.cmpi eq, %54, %158 : vector<8x128xi32>
    %160 = vector.broadcast %157 : f32 to vector<8x128xf32>
    %161 = arith.select %159, %160, %151 : vector<8x128xi1>, vector<8x128xf32>
    %cst_43 = arith.constant dense<0.000000e+00> : vector<16xf32>
    %162 = vector.multi_reduction <add>, %98, %cst_43 [0] : vector<16x16xf32> to vector<16xf32>
    %163 = vector.shape_cast %162 : vector<16xf32> to vector<1x16xf32>
    %164 = vector.shape_cast %163 : vector<1x16xf32> to vector<1x1x16xf32>
    %cst_44 = arith.constant dense<0.000000e+00> : vector<1xf32>
    %165 = vector.multi_reduction <add>, %164, %cst_44 [1, 2] : vector<1x1x16xf32> to vector<1xf32>
    %166 = vector.shape_cast %165 : vector<1xf32> to vector<1x1x1xf32>
    %167 = vector.extract %166[0, 0, 0] : f32 from vector<1x1x1xf32>
    %c6_i32 = arith.constant 6 : i32
    %168 = vector.broadcast %c6_i32 : i32 to vector<8x128xi32>
    %169 = arith.cmpi eq, %54, %168 : vector<8x128xi32>
    %170 = vector.broadcast %167 : f32 to vector<8x128xf32>
    %171 = arith.select %169, %170, %161 : vector<8x128xi1>, vector<8x128xf32>
    %cst_45 = arith.constant dense<0.000000e+00> : vector<16xf32>
    %172 = vector.multi_reduction <add>, %99, %cst_45 [0] : vector<16x16xf32> to vector<16xf32>
    %173 = vector.shape_cast %172 : vector<16xf32> to vector<1x16xf32>
    %174 = vector.shape_cast %173 : vector<1x16xf32> to vector<1x1x16xf32>
    %cst_46 = arith.constant dense<0.000000e+00> : vector<1xf32>
    %175 = vector.multi_reduction <add>, %174, %cst_46 [1, 2] : vector<1x1x16xf32> to vector<1xf32>
    %176 = vector.shape_cast %175 : vector<1xf32> to vector<1x1x1xf32>
    %177 = vector.extract %176[0, 0, 0] : f32 from vector<1x1x1xf32>
    %c7_i32 = arith.constant 7 : i32
    %178 = vector.broadcast %c7_i32 : i32 to vector<8x128xi32>
    %179 = arith.cmpi eq, %54, %178 : vector<8x128xi32>
    %180 = vector.broadcast %177 : f32 to vector<8x128xf32>
    %181 = arith.select %179, %180, %171 : vector<8x128xi1>, vector<8x128xf32>
    %cst_47 = arith.constant dense<0.000000e+00> : vector<16xf32>
    %182 = vector.multi_reduction <add>, %100, %cst_47 [0] : vector<16x16xf32> to vector<16xf32>
    %183 = vector.shape_cast %182 : vector<16xf32> to vector<1x16xf32>
    %184 = vector.shape_cast %183 : vector<1x16xf32> to vector<1x1x16xf32>
    %cst_48 = arith.constant dense<0.000000e+00> : vector<1xf32>
    %185 = vector.multi_reduction <add>, %184, %cst_48 [1, 2] : vector<1x1x16xf32> to vector<1xf32>
    %186 = vector.shape_cast %185 : vector<1xf32> to vector<1x1x1xf32>
    %187 = vector.extract %186[0, 0, 0] : f32 from vector<1x1x1xf32>
    %c8_i32 = arith.constant 8 : i32
    %188 = vector.broadcast %c8_i32 : i32 to vector<8x128xi32>
    %189 = arith.cmpi eq, %54, %188 : vector<8x128xi32>
    %190 = vector.broadcast %187 : f32 to vector<8x128xf32>
    %191 = arith.select %189, %190, %181 : vector<8x128xi1>, vector<8x128xf32>
    %c0_49 = arith.constant 0 : index
    %c0_50 = arith.constant 0 : index
    %c0_51 = arith.constant 0 : index
    %192 = vector.load %arg3[%c0_49, %c0_50, %c0_51] : memref<1x8x128xf32, #tpu.memory_space<vmem>>, vector<1x8x128xf32>
    %193 = vector.shape_cast %192 : vector<1x8x128xf32> to vector<8x128xf32>
    %194 = vector.shape_cast %191 : vector<8x128xf32> to vector<1x8x128xf32>
    tpu.vector_store %arg3[%c0_49, %c0_50, %c0_51], %194 {strides = array<i32>} : memref<1x8x128xf32, #tpu.memory_space<vmem>>, vector<1x8x128xf32>,
    return
  }
  func.func @transform_0(%arg0: i32) -> (i32, i32, i32, i32) {
    %c0_i32 = arith.constant 0 : i32
    %c0_i32_0 = arith.constant 0 : i32
    %c0_i32_1 = arith.constant 0 : i32
    %c0_i32_2 = arith.constant 0 : i32
    return %arg0, %c0_i32, %c0_i32_0, %c0_i32_1 : i32, i32, i32, i32
  }
  func.func @transform_1(%arg0: i32) -> (i32, i32, i32) {
    %c0_i32 = arith.constant 0 : i32
    %c0_i32_0 = arith.constant 0 : i32
    %c0_i32_1 = arith.constant 0 : i32
    return %arg0, %c0_i32, %c0_i32_0 : i32, i32, i32
  }
  func.func @transform_2(%arg0: i32) -> (i32, i32, i32) {
    %c0_i32 = arith.constant 0 : i32
    %c0_i32_0 = arith.constant 0 : i32
    %c0_i32_1 = arith.constant 0 : i32
    return %arg0, %c0_i32, %c0_i32_0 : i32, i32, i32
  }
}

</mosaic_0001>

<bundles_post_ra>
// kernel: my_loss_vector_intra_and_inter.1
= control target key start
LH: loop header
LB: loop body
LE: loop exit
PB: predicated region body
PF: predicated region fallthrough
CT: control target
= control target key end

     0   :  { %7 = vsyncpa [#allocation3], 0  ;;  %s1310_s0 = inlined_call_operand.hbm [shape: f32[2,2,16,16], index: 0, kind: input, shape index: {}]   ;;  %s1311_s1 = inlined_call_operand.hbm [shape: f32[2,16,16], index: 1, kind: input, shape index: {}]   ;;  %s1312_s2 = inlined_call_operand.vmem [shape: f32[2,8,128], index: 2, kind: output, shape index: {}]  }
   0x1   :  { %9 = vsyncpa [#allocation3 + $0x1], 0 }
   0x2   :  { %10 = vsyncpa [#allocation5], 0 }
   0x3   :  { %12 = vsyncpa [#allocation5 + $0x1], 0  ;;  %s1048_s9 = smov 0   ;;  %s1050_s10 = smov 0  }
   0x4   :  { %s1052_s11 = smov 0   ;;  %s1054_s12 = smov 0  }
   0x5 LB: > { %s1067_s13 = sadd.s32 4294967295, %s1024_s12   ;;  %s1070_s14 = sadd.s32 1, %s1024_s12   ;;  %s1024_s12 = sphi %s1054_s12, %s1322_s12   ;;  %s1020_s11 = sphi %s1052_s11, %s1321_s11   ;;  %s1016_s10 = sphi %s1050_s10, %s1320_s10   ;;  %s1012_s9 = sphi %s1048_s9, %s1319_s9  }
   0x6   : > { %s22_s15 = ssub.s32 %s1024_s12, %s1070_s14  ;;  %s25_s16 = sadd.s32 1, %s1020_s11 }
   0x7   : > { %p23_p0 = scmp.eq.s32.totalorder %s22_s15, 0  ;;  %p32_p1 = scmp.ne.s32.totalorder %s1020_s11, %s1016_s10 }
   0x8   : > { %p33_p2 = scmp.eq.s32.totalorder %s1024_s12, 0  ;;  %p38_p3 = scmp.ne.s32.totalorder %s1016_s10, %s1012_s9 }
   0x9   : > { %s1080_s17 = scalar_select %p23_p0, %s1020_s11, %s25_s16  }
   0xa   : > { %p34_p4 = por %p33_p2, %p32_p1  ;;  %p39_p5 = scmp.eq.s32.totalorder %s1067_s13, 0 }
   0xb   : > { %p876_p6 = scmp.lt.s32.totalorder %s1024_s12, 2  ;;  %s1089_s19 = sand.u32 1, %s1020_s11  }
   0xc   : > { %p1084_p7 = por %p39_p5, %p38_p3  ;;  %s785_s20 = sshll.u32 %s1089_s19, 5 }
   0xd   : > { %s813_s21 = sshll.u32 %s1024_s12, 9  ;;  %s118_s25 = scalar_lea.vmem [#allocation2], %s785_s20 }
   0xe   : > { %s1314_s18 = scalar_select %p1084_p7, 1, 0 }
   0xf   : > { %s1096_s24 = scalar_lea.hbm %s1310_s0, %s813_s21  ;;  %s125_s26 = sshll.u32 %s118_s25, 4  ;;  %s1098_s26 = int_to_ptr.vmem [resolvable:$true] %s125_s26 }
  0x10   : > { %p1100_p8 = pnand %p876_p6, %p34_p4  ;;  %s115_s28 = scalar_lea.sflag [#allocation3], %s1089_s19 }
  0x11   : > { %s926_s29 = scalar_lea.hbm %s1096_s24, 512  ;;  %s931_s4 = scalar_lea.hbm %s1310_s0, 1024 }
  0x12   : > { %p927_p10 = scmp.ne.s32.totalorder %s1096_s24, %s926_s29  ;;  %p928_p11 = pneg %p1100_p8 }
  0x13   : > { %p932_p0 = scmp.lt.u32.totalorder %s1096_s24, %s1310_s0  ;;  %p933_p1 = scmp.lt.u32.totalorder %s931_s4, %s926_s29 }
  0x14   : > { %p929_p12 = pnand %p928_p11, %p927_p10  ;;  %p935_p3 = scmp.lt.u32.totalorder %s926_s29, %s1096_s24 }
  0x15   : > { %p934_p2 = por %p933_p1, %p932_p0 }
  0x16   : > { %p930_p13 = pneg %p929_p12 }
  0x17   : > { %p936_p4 = por %p935_p3, %p934_p2 }
  0x19   : > { %p937_p5 = pnand %p936_p4, %p930_p13 }
  0x1b   : > { %940 = shalt.err (!%p937_p5)
}
  0x1c   : > { %s941_s7 = scalar_lea.vmem %s1098_s26, 512  ;;  %s1026_s8 = smov [#allocation2]  }
  0x1d   : > { %p942_p6 = scmp.ne.s32.totalorder %s1098_s26, %s941_s7  ;;  %s946_s9 = sshll.u32 %s1026_s8, 4  ;;  %s947_s9 = int_to_ptr.vmem [resolvable:$false] %s946_s9 }
  0x1e   : > { %s948_s15 = scalar_lea.vmem %s947_s9, 1024  ;;  %p949_p9 = scmp.lt.s32.totalorder %s1098_s26, %s947_s9 }
  0x1f   : > { %p944_p10 = pnand %p942_p6, %p928_p11  ;;  %p950_p0 = scmp.lt.s32.totalorder %s948_s15, %s941_s7 }
  0x21   : > { %p945_p12 = pneg %p944_p10  ;;  %p951_p1 = por %p950_p0, %p949_p9 }
  0x23   : > { %p952_p2 = pnand %p951_p1, %p945_p12 }
  0x25   : > { %955 = shalt.err (!%p952_p2)
}
  0x26   : > { %s1027_s16 = smov 128   ;;  %s1028_s20 = smov 8  }
  0x27   : > { %872 = dma.hbm_to_vmem [thread:$0]  (!%p1100_p8), %s1096_s24, 512, %s1098_s26, %s115_s28, %s1027_s16, %s1027_s16, %s1028_s20  }
  0x28   : > { %p154_p9 = scmp.lt.s32.totalorder %s1024_s12, 3  ;;  %s788_s21 = sshll.u32 %s1089_s19, 4 }
  0x29   : > { %s814_s22 = sshll.u32 %s1024_s12, 8  ;;  %p1316_p13 = scmp.ge.s32.totalorder %s1024_s12, 1 }
  0x2a   : > { %s1148_s30 = scalar_lea.hbm %s1311_s1, %s814_s22  ;;  %s139_s3 = scalar_lea.vmem [#allocation4], %s788_s21 }
  0x2b   : > { %p1141_p3 = pnand %p1316_p13, %p154_p9  ;;  %s146_s4 = sshll.u32 %s139_s3, 4  ;;  %s1150_s4 = int_to_ptr.vmem [resolvable:$true] %s146_s4 }
  0x2c   : > { %s136_s24 = scalar_lea.sflag [#allocation5], %s1089_s19  ;;  %s956_s26 = scalar_lea.hbm %s1148_s30, 256 }
  0x2d   : > { %p957_p4 = scmp.ne.s32.totalorder %s1148_s30, %s956_s26  ;;  %s961_s5 = scalar_lea.hbm %s1311_s1, 512 }
  0x2e   : > { %p962_p10 = scmp.lt.u32.totalorder %s1148_s30, %s1311_s1  ;;  %p963_p12 = scmp.lt.u32.totalorder %s961_s5, %s956_s26 }
  0x2f   : > { %p959_p5 = pnand %p957_p4, %p928_p11  ;;  %p965_p1 = scmp.lt.u32.totalorder %s956_s26, %s1148_s30 }
  0x30   : > { %p964_p0 = por %p963_p12, %p962_p10 }
  0x31   : > { %p960_p6 = pneg %p959_p5 }
  0x32   : > { %p966_p2 = por %p965_p1, %p964_p0 }
  0x34   : > { %p967_p9 = pnand %p966_p2, %p960_p6 }
  0x36   : > { %970 = shalt.err (!%p967_p9)
}
  0x37   : > { %s971_s8 = scalar_lea.vmem %s1150_s4, 256  ;;  %s1029_s9 = smov [#allocation4]  }
  0x38   : > { %p972_p13 = scmp.ne.s32.totalorder %s1150_s4, %s971_s8  ;;  %s976_s15 = sshll.u32 %s1029_s9, 4  ;;  %s977_s15 = int_to_ptr.vmem [resolvable:$false] %s976_s15 }
  0x39   : > { %s978_s21 = scalar_lea.vmem %s977_s15, 512  ;;  %p979_p7 = scmp.lt.s32.totalorder %s1150_s4, %s977_s15 }
  0x3a   : > { %p974_p4 = pnand %p972_p13, %p928_p11  ;;  %p980_p10 = scmp.lt.s32.totalorder %s978_s21, %s971_s8 }
  0x3c   : > { %p975_p5 = pneg %p974_p4  ;;  %p981_p12 = por %p980_p10, %p979_p7 }
  0x3e   : > { %p982_p0 = pnand %p981_p12, %p975_p5 }
  0x40   : > { %985 = shalt.err (!%p982_p0)
}
  0x41   : > { %875 = dma.hbm_to_vmem [thread:$0]  (!%p1100_p8), %s1148_s30, 256, %s1150_s4, %s136_s24, %s1027_s16, %s1027_s16, %s1028_s20  }
  0x42   : > { %158 = sbr.rel (%p1141_p3) target bundleno = 794 (0x31a), region = 28  ;;  %s160_s22 = sand.u32 (!%p1141_p3), 1, %s1016_s10  }
  0x43   : > { %s792_s25 = sshll.u32 (!%p1141_p3), %s160_s22, 5  ;;  %s161_s29 = scalar_lea.sflag (!%p1141_p3), [#allocation3], %s160_s22 }
  0x44   : > { %s1184_s3 = scalar_lea.vmem (!%p1141_p3), [#allocation2], %s792_s25  ;;  %p1318_p7 = scmp.ne.s32.totalorder (!%p1141_p3), %s1314_s18, 0 }
  0x49   : > { %1003 = dma.done.wait (%p1318_p7), %s161_s29, 512  }
  0x4a   : > { %1005 = vsyncadd (%p1318_p7), %s161_s29, 4294966784  ;;  %s793_s19 = sshll.u32 %s160_s22, 4  ;;  %s170_s27 = scalar_lea.sflag [#allocation5], %s160_s22 }
  0x4b   : > { %s173_s26 = scalar_lea.vmem [#allocation4], %s793_s19 }
  0x4c   : > { %1007 = dma.done.wait (%p1318_p7), %s170_s27, 256  }
  0x4d   : > { %1009 = vsyncadd (%p1318_p7), %s170_s27, 4294967040  ;;  %v203_v0 = vlaneseq  ;;  %v1030_v1 = vmov 0.0   ;;  %vm1031_vm0 = vmmov 0   ;;  %v1200_v8 = vld [vmem:[%s173_s26] sm:$0xff]  ;;  %v1202_v9 = vld [vmem:[%s173_s26 + $0x8] sm:$0xff]  ;;  %vm265_vm3 = vcmask 130048  }
  0x4e   : > { %823 = vmatprep.subr.bf16.mxu0 %v1030_v1  ;;  %825 = vmatprep.mubr.msk.bf16.mxu0 %vm1031_vm0, %v1030_v1  ;;  %v250_v12 = vpack.c.bf16 %v1202_v9, %v1200_v8  ;;  %v1032_v17 = vmov 1.0|1.0   ;;  %v243_v38 = vld [vmem:[%s1184_s3] sm:$0xff]  ;;  %v244_v39 = vld [vmem:[%s1184_s3 + $0x8] sm:$0xff]  ;;  %v803_v40 = vld [vmem:[%s1184_s3 + $0x10] sm:$0xff]  ;;  %v494_v50 = vsel %vm265_vm3, %v1200_v8, 0.0 }
  0x4f   : > { %v204_v2 = vshrl.u32 %v203_v0, 7  ;;  %v1195_v3 = vand.u32 127, %v203_v0  ;;  %829 = vmatprep.subr.bf16.mxu1 %v1030_v1  ;;  %831 = vmatprep.mubr.msk.bf16.mxu1 %vm1031_vm0, %v1030_v1  ;;  %v804_v41 = vld [vmem:[%s1184_s3 + $0x18] sm:$0xff]  ;;  %v251_v42 = vsub.f32 %v803_v40, %v243_v38  ;;  %v495_v51 = vsel %vm265_vm3, %v1202_v9, 0.0  ;;  %p198_p8 = scmp.lt.s32.totalorder %s1067_s13, 1 }
  0x50   : > { %824 = vmatpush3.bf16.msra.mxu0 %v250_v12  ;;  %v252_v43 = vsub.f32 %v804_v41, %v244_v39  ;;  %v496_v53 = vadd.f32 %v495_v51, %v494_v50  ;;  %vm503_vm13 = vcmask 122880  }
  0x51   : > { %v205_v4 = vadd.s32 8, %v204_v2  ;;  %v208_v5 = vsub.s32 %v204_v2, %v1195_v3  ;;  %835 = vmatprep.subr.bf16.mxu0 %v1030_v1  ;;  %v253_v44 = vmul.f32 1.442695, %v251_v42  ;;  %s1324_s13 = smov (!%p198_p8, %s1067_s13), 1 }
  0x52   : > { %v255_v45 = vmul.f32 1.442695, %v252_v43  ;;  %v497_v56 = vrot.slane %v496_v53, 4  ;;  %v474_v43 = vsub.f32 1.0, %v1200_v8  ;;  %s794_s28 = sshll.u32 %s1324_s13, 3 }
  0x53   : > { %v209_v6 = vsub.s32 %v205_v4, %v1195_v3  ;;  %v211_v7 = vsub.s32 0, %v208_v5  ;;  %vm210_vm5 = vcmp.lt.s32.totalorder %v208_v5, 0  ;;  %vm223_vm6 = vcmp.gt.s32.totalorder %v208_v5, 0  ;;  %s201_s7 = scalar_lea.vmem %s1312_s2, %s794_s28 }
  0x54   : > { %914 = vpow2.f32 %v253_v44  ;;  %v498_v62 = vadd.f32 %v497_v56, %v496_v53 }
  0x55   : > { %v795_v10 = vmin.u32 %v211_v7, %v208_v5  ;;  %v214_v11 = vsub.s32 0, %v209_v6  ;;  %vm224_vm7 = vcmp.gt.s32.totalorder %v209_v6, 0  ;;  %vm213_vm8 = vcmp.lt.s32.totalorder %v209_v6, 0 }
  0x56   : > { %916 = vpow2.f32 %v255_v45  ;;  %v499_v2 = vrot.slane %v498_v62, 2 }
  0x57   : > { %v796_v13 = vmin.u32 %v214_v11, %v209_v6  ;;  %vm216_vm1 = vcmp.le.s32.totalorder %v795_v10, 3 }
  0x58   : > { %v797_v14 = vsel %vm216_vm1, 1.0, %v1030_v1  ;;  %vm225_vm9 = vmand %vm223_vm6, %vm216_vm1  ;;  %v500_v6 = vadd.f32 %v499_v2, %v498_v62  ;;  %vm602_vm6 = vcmp.eq.s32.totalorder %v1195_v3, 4 }
  0x59   : > { %vm217_vm2 = vcmp.le.s32.totalorder %v796_v13, 3  ;;  %v799_v18 = vsel %vm225_vm9, 1.0, %v1030_v1  ;;  %vm231_vm11 = vmand %vm210_vm5, %vm216_vm1  ;;  %vm580_vm5 = vcmp.eq.s32.totalorder %v1195_v3, 3  ;;  %vm668_vm9 = vcmp.eq.s32.totalorder %v1195_v3, 7 }
  0x5a   : > { %v798_v15 = vsel %vm217_vm2, 1.0, %v1030_v1  ;;  %vm807_vm4 = vmpackc.low %vm217_vm2, %vm216_vm1  ;;  %v801_v20 = vsel %vm231_vm11, 1.0, %v1030_v1  ;;  %v501_v11 = vrot.slane %v500_v6, 1 }
  0x5b   : > { %v222_v16 = vpack.c.bf16 %v798_v15, %v797_v14  ;;  %vm226_vm10 = vmand %vm224_vm7, %vm217_vm2  ;;  %v237_v22 = vsub.f32 %v799_v18, %v801_v20  ;;  %v240_v25 = vsub.f32 %v801_v20, %v799_v18  ;;  %vm624_vm7 = vcmp.eq.s32.totalorder %v1195_v3, 5 }
  0x5c   : > { %v800_v19 = vsel %vm226_vm10, 1.0, %v1030_v1  ;;  %vm232_vm12 = vmand %vm213_vm8, %vm217_vm2  ;;  %v502_v14 = vadd.f32 %v501_v11, %v500_v6  ;;  %vm514_vm2 = vcmp.eq.s32.totalorder %v1195_v3, 0  ;;  %vm646_vm8 = vcmp.eq.s32.totalorder %v1195_v3, 6 }
  0x5d   : > { %826 = vmatmul.mubr.msk.bf16.vlgmr.msra.gmra.mrb[0].mxu0 %vm265_vm3, %v222_v16  ;;  %v802_v21 = vsel %vm232_vm12, 1.0, %v1030_v1  ;;  %vm690_vm10 = vcmp.eq.s32.totalorder %v1195_v3, 8 }
  0x5e   : > { %836 = vmatpush3.bf16.msk.msra.mxu0 %vm807_vm4, %v1032_v17  ;;  %837 = vmatprep.mubr.msk.bf16.mxu0 %vm1031_vm0, %v1030_v1  ;;  %v238_v23 = vsub.f32 %v800_v19, %v802_v21  ;;  %v241_v26 = vsub.f32 %v802_v21, %v800_v19  ;;  %v915_v46 = vpop.eup %914  ;;  %v504_v17 = vsel %vm503_vm13, %v502_v14, 0.0  ;;  %vm558_vm4 = vcmp.eq.s32.totalorder %v1195_v3, 2 }
  0x5f   : > { %v257_v48 = vadd.f32 1.0, %v915_v46  ;;  %505 = vadd.xlane.f32.xlu0 %v504_v17 }
  0x60   : > { %v239_v24 = vpack.c.bf16 %v238_v23, %v237_v22  ;;  %v242_v27 = vpack.c.bf16 %v241_v26, %v240_v25  ;;  %v917_v47 = vpop.eup %916 }
  0x61   : > { %v258_v49 = vadd.f32 1.0, %v917_v47  ;;  %918 = vrcp.f32 %v257_v48 }
  0x62   : > { %830 = vmatpush3.bf16.msra.mxu1 %v239_v24 }
  0x63   : > { %841 = vmatprep.subr.bf16.mxu1 %v1030_v1  ;;  %920 = vrcp.f32 %v258_v49  ;;  %v475_v49 = vsub.f32 1.0, %v1202_v9 }
  0x65   : > { %838 = vmatmul.mubr.msk.bf16.vlgmr.msra.gmra.mrb[4].mxu0 %vm265_vm3, %v250_v12 }
  0x6b   : > { %v1228_v52 = vpop.eup %918 }
  0x6c   : > { %v1234_v55 = vmul.f32 %v1228_v52, %v1200_v8  ;;  %v561_v58 = vsel %vm265_vm3, %v1228_v52, 0.0  ;;  %v263_v46 = vsub.f32 1.0, %v1228_v52 }
  0x6d   : > { %v1230_v54 = vpop.eup %920 }
  0x6e   : > { %v1238_v57 = vmul.f32 %v1230_v54, %v1202_v9  ;;  %v562_v59 = vsel %vm265_vm3, %v1230_v54, 0.0  ;;  %v583_v60 = vsel %vm265_vm3, %v1234_v55, 0.0 }
  0x6f   : > { %v563_v61 = vadd.f32 %v562_v59, %v561_v58 }
  0x70   : > { %v584_v63 = vsel %vm265_vm3, %v1238_v57, 0.0 }
  0x71   : > { %v585_v0 = vadd.f32 %v584_v63, %v583_v60  ;;  %v264_v60 = vsub.f32 1.0, %v1230_v54 }
  0x73   : > { %v586_v4 = vrot.slane %v585_v0, 4 }
  0x75   : > { %v587_v7 = vadd.f32 %v586_v4, %v585_v0 }
  0x77   : > { %v588_v12 = vrot.slane %v587_v7, 2 }
  0x79   : > { %v589_v15 = vadd.f32 %v588_v12, %v587_v7 }
  0x7b   : > { %v590_v18 = vrot.slane %v589_v15, 1 }
  0x7d   : > { %v591_v20 = vadd.f32 %v590_v18, %v589_v15 }
  0x7f   : > { %v592_v22 = vsel %vm503_vm13, %v591_v20, 0.0 }
  0x80   : > { %593 = vadd.xlane.f32.xlu0 %v592_v22 }
 0x130   : > { %v303_v28 = vpop.f32.mrb[0].mxu0 }
 0x131   : > { %v827_v29 = vpop.f32.mrb[1].mxu0 }
 0x132   : > { %v306_v30 = vpop.f32.mrb[2].mxu0 }
 0x133   : > { %v310_v31 = vpack.c.bf16 %v306_v30, %v303_v28  ;;  %v828_v32 = vpop.f32.mrb[3].mxu0 }
 0x135   : > { %832 = vmatmul.mubr.msk.bf16.vlgmr.msra.gmra.mrb[0].mxu1 %vm265_vm3, %v310_v31 }
 0x136   : > { %843 = vmatprep.mubr.msk.bf16.mxu1 %vm1031_vm0, %v1030_v1  ;;  %v564_v1 = vrot.slane %v563_v61, 4 }
 0x138   : > { %v392_v33 = vpop.f32.mrb[4].mxu0  ;;  %v565_v5 = vadd.f32 %v564_v1, %v563_v61 }
 0x139   : > { %v839_v34 = vpop.f32.mrb[5].mxu0 }
 0x13a   : > { %v395_v35 = vpop.f32.mrb[6].mxu0  ;;  %v566_v10 = vrot.slane %v565_v5, 2 }
 0x13b   : > { %v399_v36 = vpack.c.bf16 %v395_v35, %v392_v33  ;;  %v840_v37 = vpop.f32.mrb[7].mxu0 }
 0x13c   : > { %v567_v13 = vadd.f32 %v566_v10, %v565_v5 }
 0x13d   : > { %842 = vmatpush3.bf16.msra.mxu1 %v399_v36 }
 0x13e   : > { %v568_v16 = vrot.slane %v567_v13, 1 }
 0x140   : > { %844 = vmatmul.mubr.msk.bf16.vlgmr.msra.gmra.mrb[4].mxu1 %vm265_vm3, %v242_v27  ;;  %v569_v19 = vadd.f32 %v568_v16, %v567_v13 }
 0x142   : > { %v570_v21 = vsel %vm503_vm13, %v569_v19, 0.0 }
 0x143   : > { %571 = vadd.xlane.f32.xlu1 %v570_v21 }
 0x208   : > { %v348_v23 = vpop.f32.mrb[0].mxu1 }
 0x209   : > { %v833_v24 = vpop.f32.mrb[1].mxu1  ;;  %v444_v28 = vmul.f32 %v348_v23, %v348_v23 }
 0x20a   : > { %v351_v25 = vpop.f32.mrb[2].mxu1 }
 0x20b   : > { %v834_v26 = vpop.f32.mrb[3].mxu1  ;;  %v445_v32 = vmul.f32 %v351_v25, %v351_v25 }
 0x213   : > { %v437_v27 = vpop.f32.mrb[4].mxu1 }
 0x214   : > { %v446_v29 = vmul.f32 %v437_v27, %v437_v27  ;;  %v845_v30 = vpop.f32.mrb[5].mxu1 }
 0x215   : > { %v440_v31 = vpop.f32.mrb[6].mxu1 }
 0x216   : > { %v448_v33 = vadd.f32 %v446_v29, %v444_v28  ;;  %v447_v34 = vmul.f32 %v440_v31, %v440_v31  ;;  %v846_v35 = vpop.f32.mrb[7].mxu1 }
 0x218   : > { %v450_v36 = vadd.f32 1e-15, %v448_v33  ;;  %v449_v37 = vadd.f32 %v447_v34, %v445_v32 }
 0x21a   : > { %922 = vrsqrt.f32 %v450_v36  ;;  %v451_v38 = vadd.f32 1e-15, %v449_v37  ;;  %vm454_vm14 = vcmp.eq.f32.partialorder %v450_v36, inf  ;;  %v457_v42 = vand.u32 2147483648, %v450_v36 }
 0x21b   : > { %vm456_vm15 = vcmp.eq.f32.partialorder %v450_v36, 0.0 }
 0x21c   : > { %924 = vrsqrt.f32 %v451_v38  ;;  %vm461_vm0 = vcmp.eq.f32.partialorder %v451_v38, inf  ;;  %v464_v48 = vand.u32 2147483648, %v451_v38  ;;  %vm463_vm1 = vcmp.eq.f32.partialorder %v451_v38, 0.0 }
 0x224   : > { %v923_v39 = vpop.eup %922 }
 0x225   : > { %v453_v40 = vmul.f32 %v923_v39, %v450_v36 }
 0x226   : > { %v925_v41 = vpop.eup %924 }
 0x227   : > { %v460_v44 = vmul.f32 %v925_v41, %v451_v38  ;;  %v455_v45 = vsel %vm454_vm14, %v450_v36, %v453_v40 }
 0x228   : > { %v458_v47 = vsel %vm456_vm15, %v457_v42, %v455_v45 }
 0x229   : > { %v462_v50 = vsel %vm461_vm0, %v451_v38, %v460_v44  ;;  %v466_v51 = vmul.f32 %v458_v47, %v1200_v8  ;;  %v488_v53 = vmul.f32 %v1234_v55, %v458_v47  ;;  %v517_v58 = vsel %vm265_vm3, %v458_v47, 0.0 }
 0x22a   : > { %v465_v56 = vsel %vm463_vm1, %v464_v48, %v462_v50  ;;  %v486_v59 = vmul.f32 %v1228_v52, %v458_v47 }
 0x22b   : > { %v518_v61 = vsel %vm265_vm3, %v465_v56, 0.0  ;;  %v467_v62 = vmul.f32 %v465_v56, %v1202_v9  ;;  %v539_v63 = vsel %vm265_vm3, %v466_v51, 0.0  ;;  %v489_v0 = vmul.f32 %v1238_v57, %v465_v56 }
 0x22c   : > { %v519_v1 = vadd.f32 %v518_v61, %v517_v58  ;;  %v627_v2 = vsel %vm265_vm3, %v488_v53, 0.0  ;;  %v487_v55 = vmul.f32 %v1230_v54, %v465_v56  ;;  %v605_v4 = vsel %vm265_vm3, %v486_v59, 0.0 }
 0x22d   : > { %v540_v5 = vsel %vm265_vm3, %v467_v62, 0.0  ;;  %v628_v6 = vsel %vm265_vm3, %v489_v0, 0.0  ;;  %v470_v7 = vmul.f32 0.005, %v466_v51  ;;  %v471_v10 = vmul.f32 0.005, %v467_v62 }
 0x22e   : > { %v520_v11 = vrot.slane %v519_v1, 4  ;;  %v541_v12 = vadd.f32 %v540_v5, %v539_v63  ;;  %v629_v13 = vadd.f32 %v628_v6, %v627_v2  ;;  %v606_v14 = vsel %vm265_vm3, %v487_v55, 0.0 }
 0x22f   : > { %v607_v15 = vadd.f32 %v606_v14, %v605_v4  ;;  %v472_v57 = vadd.f32 %v470_v7, %v1200_v8  ;;  %v473_v16 = vadd.f32 %v471_v10, %v1202_v9  ;;  %v476_v17 = vsub.f32 %v458_v47, %v466_v51  ;;  %v506_v4 = vpop.xlane.xlu0 %505 }
 0x230   : > { %v521_v18 = vadd.f32 %v520_v11, %v519_v1  ;;  %v542_v19 = vrot.slane %v541_v12, 4  ;;  %v630_v20 = vrot.slane %v629_v13, 4  ;;  %v477_v21 = vsub.f32 %v465_v56, %v467_v62 }
 0x231   : > { %v608_v22 = vrot.slane %v607_v15, 4  ;;  %v482_v23 = vmul.f32 %v1228_v52, %v472_v57  ;;  %v483_v24 = vmul.f32 %v1230_v54, %v473_v16  ;;  %v478_v25 = vmul.f32 0.2, %v476_v17 }
 0x232   : > { %v522_v26 = vrot.slane %v521_v18, 2  ;;  %v543_v27 = vadd.f32 %v542_v19, %v541_v12  ;;  %v631_v28 = vadd.f32 %v630_v20, %v629_v13  ;;  %v479_v29 = vmul.f32 0.2, %v477_v21 }
 0x233   : > { %v609_v30 = vadd.f32 %v608_v22, %v607_v15  ;;  %v490_v31 = vmul.f32 %v482_v23, %v482_v23  ;;  %v491_v8 = vmul.f32 %v483_v24, %v483_v24  ;;  %v480_v32 = vadd.f32 %v478_v25, %v474_v43  ;;  %v594_v22 = vpop.xlane.xlu0 %593  ;;  %v572_v23 = vpop.xlane.xlu1 %571 }
 0x234   : > { %v523_v9 = vadd.f32 %v522_v26, %v521_v18  ;;  %v544_v33 = vrot.slane %v543_v27, 2  ;;  %v632_v34 = vrot.slane %v631_v28, 2  ;;  %v481_v35 = vadd.f32 %v479_v29, %v475_v49 }
 0x235   : > { %v610_v36 = vrot.slane %v609_v30, 2  ;;  %v649_v37 = vsel %vm265_vm3, %v490_v31, 0.0  ;;  %v650_v52 = vsel %vm265_vm3, %v491_v8, 0.0  ;;  %v484_v38 = vmul.f32 %v480_v32, %v263_v46 }
 0x236   : > { %v524_v54 = vrot.slane %v523_v9, 1  ;;  %v545_v39 = vadd.f32 %v544_v33, %v543_v27  ;;  %v633_v40 = vadd.f32 %v632_v34, %v631_v28  ;;  %v651_v41 = vadd.f32 %v650_v52, %v649_v37 }
 0x237   : > { %v611_v42 = vadd.f32 %v610_v36, %v609_v30  ;;  %v485_v44 = vmul.f32 %v481_v35, %v264_v60  ;;  %v492_v45 = vmul.f32 %v484_v38, %v484_v38  ;;  %v507_v5 = vrot.slane %v506_v4, 4 }
 0x238   : > { %v525_v47 = vadd.f32 %v524_v54, %v523_v9  ;;  %v546_v48 = vrot.slane %v545_v39, 1  ;;  %v634_v43 = vrot.slane %v633_v40, 1  ;;  %v652_v50 = vrot.slane %v651_v41, 4 }
 0x239   : > { %v612_v51 = vrot.slane %v611_v42, 1  ;;  %v493_v53 = vmul.f32 %v485_v44, %v485_v44  ;;  %v671_v46 = vsel %vm265_vm3, %v492_v45, 0.0  ;;  %v508_v11 = vadd.f32 %v507_v5, %v506_v4 }
 0x23a   : > { %v526_v49 = vsel %vm503_vm13, %v525_v47, 0.0  ;;  %v547_v56 = vadd.f32 %v546_v48, %v545_v39  ;;  %v635_v58 = vadd.f32 %v634_v43, %v633_v40  ;;  %v653_v59 = vadd.f32 %v652_v50, %v651_v41 }
 0x23b   : > { %527 = vadd.xlane.f32.xlu0 %v526_v49  ;;  %v672_v61 = vsel %vm265_vm3, %v493_v53, 0.0  ;;  %v613_v60 = vadd.f32 %v612_v51, %v611_v42  ;;  %v509_v57 = vrot.slane %v508_v11, 2  ;;  %v595_v24 = vrot.slane %v594_v22, 4 }
 0x23c   : > { %v548_v62 = vsel %vm503_vm13, %v547_v56, 0.0  ;;  %v654_v63 = vrot.slane %v653_v59, 2  ;;  %v673_v0 = vadd.f32 %v672_v61, %v671_v46  ;;  %v636_v1 = vsel %vm503_vm13, %v635_v58, 0.0 }
 0x23d   : > { %549 = vadd.xlane.f32.xlu1 %v548_v62  ;;  %v614_v6 = vsel %vm503_vm13, %v613_v60, 0.0  ;;  %v510_v18 = vadd.f32 %v509_v57, %v508_v11  ;;  %v573_v25 = vrot.slane %v572_v23, 4  ;;  %v596_v26 = vadd.f32 %v595_v24, %v594_v22 }
 0x23e   : > { %v655_v2 = vadd.f32 %v654_v63, %v653_v59  ;;  %v674_v55 = vrot.slane %v673_v0, 4  ;;  %vm536_vm3 = vcmp.eq.s32.totalorder %v1195_v3, 1 }
 0x23f   : > { %637 = vadd.xlane.f32.xlu0 %v636_v1  ;;  %v511_v20 = vrot.slane %v510_v18, 1  ;;  %v574_v27 = vadd.f32 %v573_v25, %v572_v23  ;;  %v597_v30 = vrot.slane %v596_v26, 2 }
 0x240   : > { %v656_v7 = vrot.slane %v655_v2, 1  ;;  %v675_v10 = vadd.f32 %v674_v55, %v673_v0 }
 0x241   : > { %615 = vadd.xlane.f32.xlu1 %v614_v6  ;;  %v512_v21 = vadd.f32 %v511_v20, %v510_v18  ;;  %v575_v31 = vrot.slane %v574_v27, 2  ;;  %v598_v38 = vadd.f32 %v597_v30, %v596_v26 }
 0x242   : > { %v657_v12 = vadd.f32 %v656_v7, %v655_v2  ;;  %v676_v13 = vrot.slane %v675_v10, 2 }
 0x243   : > { %847 = vpush %v512_v21  ;;  %v576_v52 = vadd.f32 %v575_v31, %v574_v27  ;;  %v599_v50 = vrot.slane %v598_v38, 1 }
 0x244   : > { %v658_v14 = vsel %vm503_vm13, %v657_v12, 0.0  ;;  %v677_v15 = vadd.f32 %v676_v13, %v675_v10 }
 0x245   : > { %659 = vadd.xlane.f32.xlu1 %v658_v14  ;;  %v577_v43 = vrot.slane %v576_v52, 1  ;;  %v600_v0 = vadd.f32 %v599_v50, %v598_v38 }
 0x246   : > { %v678_v16 = vrot.slane %v677_v15, 1 }
 0x247   : > { %v578_v62 = vadd.f32 %v577_v43, %v576_v52 }
 0x248   : > { %v679_v17 = vadd.f32 %v678_v16, %v677_v15 }
 0x24a   : > { %v680_v19 = vsel %vm503_vm13, %v679_v17, 0.0 }
 0x24b   : > { %681 = vadd.xlane.f32.xlu0 %v680_v19 }
 0x274   : > { %s848_s18 = spop %847 }
 0x275   : > { %v515_v57 = vstv %s848_s18 }
 0x276   : > { %v516_v16 = vsel %vm514_vm2, %v515_v57, 0.0 }
 0x2c8   : > { %v528_v28 = vpop.xlane.xlu0 %527 }
 0x2c9   : > { %v529_v29 = vrot.slane %v528_v28, 4 }
 0x2ca   : > { %v550_v8 = vpop.xlane.xlu1 %549 }
 0x2cb   : > { %v530_v32 = vadd.f32 %v529_v29, %v528_v28  ;;  %v551_v9 = vrot.slane %v550_v8, 4 }
 0x2cc   : > { %v638_v33 = vpop.xlane.xlu0 %637 }
 0x2cd   : > { %v531_v34 = vrot.slane %v530_v32, 2  ;;  %v552_v35 = vadd.f32 %v551_v9, %v550_v8  ;;  %v639_v36 = vrot.slane %v638_v33, 4 }
 0x2ce   : > { %v616_v37 = vpop.xlane.xlu1 %615 }
 0x2cf   : > { %v553_v54 = vrot.slane %v552_v35, 2  ;;  %v640_v39 = vadd.f32 %v639_v36, %v638_v33  ;;  %v617_v40 = vrot.slane %v616_v37, 4  ;;  %v532_v41 = vadd.f32 %v531_v34, %v530_v32 }
 0x2d1   : > { %v641_v42 = vrot.slane %v640_v39, 2  ;;  %v618_v44 = vadd.f32 %v617_v40, %v616_v37  ;;  %v533_v45 = vrot.slane %v532_v41, 1  ;;  %v554_v47 = vadd.f32 %v553_v54, %v552_v35 }
 0x2d2   : > { %v660_v48 = vpop.xlane.xlu1 %659 }
 0x2d3   : > { %v619_v51 = vrot.slane %v618_v44, 2  ;;  %v661_v53 = vrot.slane %v660_v48, 4  ;;  %v534_v49 = vadd.f32 %v533_v45, %v532_v41  ;;  %v555_v56 = vrot.slane %v554_v47, 1 }
 0x2d4   : > { %v642_v58 = vadd.f32 %v641_v42, %v640_v39 }
 0x2d5   : > { %v662_v59 = vadd.f32 %v661_v53, %v660_v48  ;;  %849 = vpush %v534_v49  ;;  %v556_v46 = vadd.f32 %v555_v56, %v554_v47  ;;  %v620_v61 = vadd.f32 %v619_v51, %v618_v44 }
 0x2d6   : > { %v643_v60 = vrot.slane %v642_v58, 1 }
 0x2d7   : > { %v663_v63 = vrot.slane %v662_v59, 2  ;;  %851 = vpush %v556_v46  ;;  %v621_v1 = vrot.slane %v620_v61, 1 }
 0x2d8   : > { %v682_v2 = vpop.xlane.xlu0 %681  ;;  %853 = vpush %v578_v62  ;;  %v644_v6 = vadd.f32 %v643_v60, %v642_v58 }
 0x2d9   : > { %v664_v55 = vadd.f32 %v663_v63, %v662_v59  ;;  %v683_v4 = vrot.slane %v682_v2, 4  ;;  %855 = vpush %v600_v0  ;;  %v622_v5 = vadd.f32 %v621_v1, %v620_v61 }
 0x2db   : > { %v684_v7 = vadd.f32 %v683_v4, %v682_v2  ;;  %857 = vpush %v622_v5  ;;  %v665_v10 = vrot.slane %v664_v55, 1 }
 0x2dc   : > { %859 = vpush %v644_v6 }
 0x2dd   : > { %v685_v11 = vrot.slane %v684_v7, 2  ;;  %v666_v12 = vadd.f32 %v665_v10, %v664_v55 }
 0x2df   : > { %v686_v13 = vadd.f32 %v685_v11, %v684_v7  ;;  %861 = vpush %v666_v12 }
 0x2e1   : > { %v687_v14 = vrot.slane %v686_v13, 1 }
 0x2e3   : > { %v688_v15 = vadd.f32 %v687_v14, %v686_v13 }
 0x2e5   : > { %863 = vpush %v688_v15 }
 0x306   : > { %s850_s16 = spop %849 }
 0x307   : > { %v537_v17 = vstv %s850_s16 }
 0x308   : > { %v538_v18 = vsel %vm536_vm3, %v537_v17, %v516_v16  ;;  %s852_s20 = spop %851 }
 0x309   : > { %v559_v19 = vstv %s852_s20  ;;  %s854_s23 = spop %853 }
 0x30a   : > { %v560_v20 = vsel %vm558_vm4, %v559_v19, %v538_v18  ;;  %v581_v21 = vstv %s854_s23  ;;  %s856_s30 = spop %855 }
 0x30b   : > { %v582_v22 = vsel %vm580_vm5, %v581_v21, %v560_v20  ;;  %v603_v23 = vstv %s856_s30 }
 0x30c   : > { %s858_s4 = spop %857  ;;  %v604_v24 = vsel %vm602_vm6, %v603_v23, %v582_v22 }
 0x30d   : > { %v625_v25 = vstv %s858_s4  ;;  %s860_s24 = spop %859 }
 0x30e   : > { %v626_v26 = vsel %vm624_vm7, %v625_v25, %v604_v24  ;;  %v647_v27 = vstv %s860_s24 }
 0x30f   : > { %v648_v29 = vsel %vm646_vm8, %v647_v27, %v626_v26 }
 0x310   : > { %s862_s12 = spop %861 }
 0x311   : > { %v669_v28 = vstv %s862_s12 }
 0x312   : > { %v670_v30 = vsel %vm668_vm9, %v669_v28, %v648_v29 }
 0x316   : > { %s864_s8 = spop %863 }
 0x317   : > { %v691_v31 = vstv %s864_s8 }
 0x318   : > { %v692_v8 = vsel %vm690_vm10, %v691_v31, %v670_v30 }
 0x319   : > { %693 = vst [vmem:[%s201_s7] sm:$0xff] %v692_v8 }
 0x31a PF: > { %p15_p11 = scmp.ge.s32.totalorder %s1070_s14, 4   ;;  %s1319_s9 = smov %s1016_s10 }
 0x31b   : > { %s1320_s10 = smov %s1020_s11  ;;  %s1321_s11 = smov %s1080_s17 }
 0x31c   : > { %s1322_s12 = smov %s1070_s14  ;;  %17 = sbr.rel (!%p15_p11) target bundleno = 5 (0x5), region = 82 }
 0x323   :  { %713 = vsyncpa [#allocation3], 1 }
 0x324   :  { %715 = vsyncpa [#allocation3 + $0x1], 1 }
 0x325   :  { %716 = vsyncpa [#allocation5], 1 }
 0x326   :  { %718 = vsyncpa [#allocation5 + $0x1], 1 }

</bundles_post_ra>
